<compile_context>
chip_gen: v7x
topology: tpu7x:2x2x1
jax: 0.10.0
libtpu: 0.0.40
codegen_flags: <defaults>
</compile_context>

<pallas_src>
import functools

import jax
import jax.numpy as jnp
from jax.experimental import pallas as pl
from jax.experimental.pallas import tpu as pltpu


def _round_up(x, m):
    return ((x + m - 1) // m) * m


def _bigram_infer_kernel(idx_ref, table_ref, logits_ref):
    # idx_ref:    (TILE_N, 1) int32      table_ref: (V_pad, V_pad) f32
    # logits_ref: (TILE_N, V_pad) f32
    tn, vp = logits_ref.shape
    idx = idx_ref[...]                                         # (TILE_N, 1)
    col = jax.lax.broadcasted_iota(jnp.int32, (tn, vp), 1)
    onehot = (col == idx).astype(jnp.float32)                  # (TILE_N, V_pad)
    logits_ref[...] = jnp.dot(onehot, table_ref[...],
                              preferred_element_type=jnp.float32)


def _bigram_train_kernel(idx_ref, tgt_ref, table_ref, logits_ref, loss_ref, *,
                         n_tokens, v_vocab, tile_n):
    # idx_ref/tgt_ref: (TILE_N, 1) int32   table_ref: (V_pad, V_pad) f32
    # logits_ref:      (TILE_N, V_pad) f32
    # loss_ref:        (8, 128) f32  -- this tile's partial CE sum, broadcast
    i = pl.program_id(0)
    tn, vp = logits_ref.shape

    idx = idx_ref[...]                                         # (TILE_N, 1)
    tgt = tgt_ref[...]                                         # (TILE_N, 1)
    col = jax.lax.broadcasted_iota(jnp.int32, (tn, vp), 1)

    # Embedding lookup == one-hot(idx) @ table on the MXU (lane-dense, padded V).
    onehot = (col == idx).astype(jnp.float32)
    logits = jnp.dot(onehot, table_ref[...],
                     preferred_element_type=jnp.float32)       # (TILE_N, V_pad)
    logits_ref[...] = logits

    # Fused cross-entropy over the valid vocab lanes only.
    lane_ok = col < v_vocab
    masked = jnp.where(lane_ok, logits, jnp.float32(-1e30))
    m = jnp.max(masked, axis=-1, keepdims=True)                # (TILE_N, 1)
    p = jnp.where(lane_ok, jnp.exp(logits - m), 0.0)
    lse = m + jnp.log(jnp.sum(p, axis=-1, keepdims=True))      # (TILE_N, 1)
    # Target pick via compare+select (no second one-hot temporary).
    picked = jnp.sum(jnp.where(col == tgt, logits, 0.0),
                     axis=-1, keepdims=True)                   # (TILE_N, 1)

    # Mask out padded token rows, emit this tile's partial sum (mean done outside).
    row = jax.lax.broadcasted_iota(jnp.int32, (tn, 1), 0) + i * tile_n
    per_row = jnp.where(row < n_tokens, lse - picked, 0.0)
    partial = jnp.sum(per_row)
    loss_ref[...] = jnp.full(loss_ref.shape, partial, dtype=jnp.float32)


def bigram_forward(idx, table, targets=None, *, tile_n=None):
    """Pallas-backed BigramLanguageModel.forward.

    idx:     (B, T) int token ids
    table:   (V, V) float32 embedding table (nn.Embedding weight)
    targets: optional (B, T) int token ids
    returns: (logits, loss) -- logits is (B, T, V) when targets is None,
             (B*T, V) otherwise (matching the PyTorch module); loss is a
             scalar f32 or None.
    """
    idx = jnp.asarray(idx, jnp.int32)
    table = jnp.asarray(table, jnp.float32)
    B, T = idx.shape
    V = table.shape[0]
    N = B * T

    v_pad = _round_up(V, 128)                    # lane-dense vocab axis
    if tile_n is None:
        tile_n = min(512, _round_up(N, 8))       # fits v7x 64 MiB VMEM comfortably
    tile_n = max(8, _round_up(tile_n, 8))
    num_tiles = pl.cdiv(N, tile_n)
    n_pad = num_tiles * tile_n

    table_p = jnp.pad(table, ((0, v_pad - V), (0, v_pad - V)))
    idx_p = jnp.pad(idx.reshape(-1), (0, n_pad - N)).reshape(n_pad, 1)

    tok_spec = pl.BlockSpec((tile_n, 1), lambda i: (i, 0))
    table_spec = pl.BlockSpec((v_pad, v_pad), lambda i: (0, 0))   # VMEM-resident
    logits_spec = pl.BlockSpec((tile_n, v_pad), lambda i: (i, 0))
    cparams = pltpu.CompilerParams(dimension_semantics=("parallel",))

    if targets is None:
        logits_p = pl.pallas_call(
            _bigram_infer_kernel,
            out_shape=jax.ShapeDtypeStruct((n_pad, v_pad), jnp.float32),
            grid=(num_tiles,),
            in_specs=[tok_spec, table_spec],
            out_specs=logits_spec,
            compiler_params=cparams,
        )(idx_p, table_p)
        logits = logits_p[:N, :V].reshape(B, T, V)
        return logits, None

    tgt_p = jnp.pad(jnp.asarray(targets, jnp.int32).reshape(-1),
                    (0, n_pad - N)).reshape(n_pad, 1)

    kernel = functools.partial(_bigram_train_kernel,
                               n_tokens=N, v_vocab=V, tile_n=tile_n)
    logits_p, loss_part = pl.pallas_call(
        kernel,
        out_shape=(
            jax.ShapeDtypeStruct((n_pad, v_pad), jnp.float32),
            jax.ShapeDtypeStruct((num_tiles * 8, 128), jnp.float32),
        ),
        grid=(num_tiles,),
        in_specs=[tok_spec, tok_spec, table_spec],
        out_specs=(
            logits_spec,
            pl.BlockSpec((8, 128), lambda i: (i, 0)),   # per-tile partial loss sum
        ),
        compiler_params=cparams,
    )(idx_p, tgt_p, table_p)

    # Per-tile partial sums -> mean over the true N (outside the kernel, so the
    # grid axis stays "parallel"-safe).
    loss = loss_part.reshape(num_tiles, 8, 128)[:, 0, 0].sum() / N
    logits = logits_p[:N, :V]                    # PyTorch returns (B*T, V) here
    return logits, loss


if __name__ == "__main__":
    # Derive the vocab exactly like the PyTorch module: from a text corpus.
    text = "hello pallas tpu bigram language model"
    chars = sorted(list(set(text)))
    vocab_size = len(chars)

    key = jax.random.PRNGKey(0)
    k_table, k_idx, k_tgt = jax.random.split(key, 3)
    # nn.Embedding default init ~ N(0, 1).
    table = jax.random.normal(k_table, (vocab_size, vocab_size), dtype=jnp.float32)

    B, T = 2, 8
    idx = jax.random.randint(k_idx, (B, T), 0, vocab_size, dtype=jnp.int32)
    targets = jax.random.randint(k_tgt, (B, T), 0, vocab_size, dtype=jnp.int32)

    # Training path: logits (B*T, V) + scalar loss.
    logits, loss = bigram_forward(idx, table, targets)
    jax.block_until_ready((logits, loss))

    # Inference/generation path: logits (B, T, V), loss None.
    logits_inf, loss_none = bigram_forward(idx, table, None)
    jax.block_until_ready(logits_inf)

    # Pure-JAX reference matching the PyTorch module (exact f32 gather).
    ref_logits_btv = table[idx]                                  # (B, T, V)
    ref_flat = ref_logits_btv.reshape(B * T, vocab_size)
    lse = jax.scipy.special.logsumexp(ref_flat, axis=-1)
    picked = ref_flat[jnp.arange(B * T), targets.reshape(-1)]
    ref_loss = jnp.mean(lse - picked)

    assert logits.shape == (B * T, vocab_size), "train-path logits shape mismatch"
    assert jnp.allclose(logits, ref_flat, atol=1e-5), "logits mismatch"
    assert jnp.allclose(loss, ref_loss, atol=1e-5), "loss mismatch"
    assert loss_none is None, "inference path must return loss=None"
    assert logits_inf.shape == (B, T, vocab_size), "infer-path logits shape mismatch"
    assert jnp.allclose(logits_inf, ref_logits_btv, atol=1e-5), "infer logits mismatch"

    print("KERNEL_OK")
</pallas_src>

<mosaic_0001>
module attributes {stable_mosaic.version = 11 : i64} {
  func.func @_bigram_train_kernel(%arg0: i32, %arg1: memref<16x1xi32, #tpu.memory_space<vmem>>, %arg2: memref<16x1xi32, #tpu.memory_space<vmem>>, %arg3: memref<128x128xf32, #tpu.memory_space<vmem>>, %arg4: memref<16x128xf32, #tpu.memory_space<vmem>>, %arg5: memref<8x128xf32, #tpu.memory_space<vmem>>) attributes {dimension_semantics = [#tpu.dimension_semantics<parallel>], iteration_bounds = array<i64: 1>, scalar_prefetch = 0 : i64, scratch_operands = 0 : i64, tpu.core_type = #tpu.core_type<tc>, window_params = [{transform_indices = @transform_0, window_bounds = array<i64: 16, 1>}, {transform_indices = @transform_1, window_bounds = array<i64: 16, 1>}, {pipeline_mode = #tpu.pipeline_mode<synchronous>, transform_indices = @transform_2, window_bounds = array<i64: 128, 128>}, {transform_indices = @transform_3, window_bounds = array<i64: 16, 128>}, {transform_indices = @transform_4, window_bounds = array<i64: 8, 128>}]} {
    %c0 = arith.constant 0 : index
    %c0_0 = arith.constant 0 : index
    %0 = vector.load %arg1[%c0, %c0_0] : memref<16x1xi32, #tpu.memory_space<vmem>>, vector<16x1xi32>
    %c0_1 = arith.constant 0 : index
    %c0_2 = arith.constant 0 : index
    %1 = vector.load %arg2[%c0_1, %c0_2] : memref<16x1xi32, #tpu.memory_space<vmem>>, vector<16x1xi32>
    %2 = tpu.iota {dimensions = array<i32: 1>} : vector<16x128xi32>
    %3 = vector.broadcast %0 : vector<16x1xi32> to vector<16x128xi32>
    %4 = arith.cmpi eq, %2, %3 : vector<16x128xi32>
    %5 = arith.extui %4 : vector<16x128xi1> to vector<16x128xi32>
    %6 = arith.sitofp %5 : vector<16x128xi32> to vector<16x128xf32>
    %c0_3 = arith.constant 0 : index
    %c0_4 = arith.constant 0 : index
    %7 = vector.load %arg3[%c0_3, %c0_4] : memref<128x128xf32, #tpu.memory_space<vmem>>, vector<128x128xf32>
    %cst = arith.constant dense<0.000000e+00> : vector<16x128xf32>
    %8 = tpu.matmul %6, %7, %cst {dimension_numbers = #tpu.dot_dimension_numbers<[1], [0], [0], [1], [0, 0, 1, 1], [], []>} : vector<16x128xf32>, vector<128x128xf32>, vector<16x128xf32> -> vector<16x128xf32>
    %c0_5 = arith.constant 0 : index
    %c0_6 = arith.constant 0 : index
    %9 = vector.load %arg4[%c0_5, %c0_6] : memref<16x128xf32, #tpu.memory_space<vmem>>, vector<16x128xf32>
    tpu.vector_store %arg4[%c0_5, %c0_6], %8 {strides = array<i32>} : memref<16x128xf32, #tpu.memory_space<vmem>>, vector<16x128xf32>,
    %c17_i32 = arith.constant 17 : i32
    %10 = vector.broadcast %c17_i32 : i32 to vector<16x128xi32>
    %11 = arith.cmpi slt, %2, %10 : vector<16x128xi32>
    %cst_7 = arith.constant -1.000000e+30 : f32
    %12 = vector.broadcast %cst_7 : f32 to vector<16x128xf32>
    %13 = arith.select %11, %8, %12 : vector<16x128xi1>, vector<16x128xf32>
    %cst_8 = arith.constant dense<0xFF800000> : vector<16xf32>
    %14 = vector.multi_reduction <maximumf>, %13, %cst_8 [1] : vector<16x128xf32> to vector<16xf32>
    %15 = vector.shape_cast %14 : vector<16xf32> to vector<16x1xf32>
    %16 = vector.broadcast %15 : vector<16x1xf32> to vector<16x128xf32>
    %17 = arith.subf %8, %16 : vector<16x128xf32>
    %18 = math.exp %17 : vector<16x128xf32>
    %cst_9 = arith.constant 0.000000e+00 : f32
    %19 = vector.broadcast %cst_9 : f32 to vector<16x128xf32>
    %20 = arith.select %11, %18, %19 : vector<16x128xi1>, vector<16x128xf32>
    %cst_10 = arith.constant dense<0.000000e+00> : vector<16xf32>
    %21 = vector.multi_reduction <add>, %20, %cst_10 [1] : vector<16x128xf32> to vector<16xf32>
    %22 = vector.shape_cast %21 : vector<16xf32> to vector<16x1xf32>
    %23 = math.log %22 : vector<16x1xf32>
    %24 = arith.addf %15, %23 : vector<16x1xf32>
    %25 = vector.broadcast %1 : vector<16x1xi32> to vector<16x128xi32>
    %26 = arith.cmpi eq, %2, %25 : vector<16x128xi32>
    %cst_11 = arith.constant 0.000000e+00 : f32
    %27 = vector.broadcast %cst_11 : f32 to vector<16x128xf32>
    %28 = arith.select %26, %8, %27 : vector<16x128xi1>, vector<16x128xf32>
    %cst_12 = arith.constant dense<0.000000e+00> : vector<16xf32>
    %29 = vector.multi_reduction <add>, %28, %cst_12 [1] : vector<16x128xf32> to vector<16xf32>
    %30 = vector.shape_cast %29 : vector<16xf32> to vector<16x1xf32>
    %31 = tpu.iota {dimensions = array<i32: 0>} : vector<16x1xi32>
    %c16_i32 = arith.constant 16 : i32
    %32 = arith.muli %arg0, %c16_i32 : i32
    %33 = vector.broadcast %32 : i32 to vector<16x1xi32>
    %34 = arith.addi %31, %33 : vector<16x1xi32>
    %c16_i32_13 = arith.constant 16 : i32
    %35 = vector.broadcast %c16_i32_13 : i32 to vector<16x1xi32>
    %36 = arith.cmpi slt, %34, %35 : vector<16x1xi32>
    %37 = arith.subf %24, %30 : vector<16x1xf32>
    %cst_14 = arith.constant 0.000000e+00 : f32
    %38 = vector.broadcast %cst_14 : f32 to vector<16x1xf32>
    %39 = arith.select %36, %37, %38 : vector<16x1xi1>, vector<16x1xf32>
    %40 = vector.shape_cast %39 : vector<16x1xf32> to vector<1x16x1xf32>
    %cst_15 = arith.constant dense<0.000000e+00> : vector<1xf32>
    %41 = vector.multi_reduction <add>, %40, %cst_15 [1, 2] : vector<1x16x1xf32> to vector<1xf32>
    %42 = vector.shape_cast %41 : vector<1xf32> to vector<1x1x1xf32>
    %43 = vector.extract %42[0, 0, 0] : f32 from vector<1x1x1xf32>
    %44 = vector.broadcast %43 : f32 to vector<8x128xf32>
    %c0_16 = arith.constant 0 : index
    %c0_17 = arith.constant 0 : index
    %45 = vector.load %arg5[%c0_16, %c0_17] : memref<8x128xf32, #tpu.memory_space<vmem>>, vector<8x128xf32>
    tpu.vector_store %arg5[%c0_16, %c0_17], %44 {strides = array<i32>} : memref<8x128xf32, #tpu.memory_space<vmem>>, vector<8x128xf32>,
    return
  }
  func.func @transform_0(%arg0: i32) -> (i32, i32) {
    %c0_i32 = arith.constant 0 : i32
    %c0_i32_0 = arith.constant 0 : i32
    return %arg0, %c0_i32 : i32, i32
  }
  func.func @transform_1(%arg0: i32) -> (i32, i32) {
    %c0_i32 = arith.constant 0 : i32
    %c0_i32_0 = arith.constant 0 : i32
    return %arg0, %c0_i32 : i32, i32
  }
  func.func @transform_2(%arg0: i32) -> (i32, i32) {
    %c0_i32 = arith.constant 0 : i32
    %c0_i32_0 = arith.constant 0 : i32
    %c0_i32_1 = arith.constant 0 : i32
    return %c0_i32, %c0_i32_0 : i32, i32
  }
  func.func @transform_3(%arg0: i32) -> (i32, i32) {
    %c0_i32 = arith.constant 0 : i32
    %c0_i32_0 = arith.constant 0 : i32
    return %arg0, %c0_i32 : i32, i32
  }
  func.func @transform_4(%arg0: i32) -> (i32, i32) {
    %c0_i32 = arith.constant 0 : i32
    %c0_i32_0 = arith.constant 0 : i32
    return %arg0, %c0_i32 : i32, i32
  }
}

</mosaic_0001>

<bundles_post_ra>
// kernel: tpu_custom_call.1
= control target key start
LH: loop header
LB: loop body
LE: loop exit
PB: predicated region body
PF: predicated region fallthrough
CT: control target
= control target key end

     0   :  { %10 = vsyncpa [#allocation3], 0  ;;  %s511_s0 = inlined_call_operand.vmem [shape: s32[16,1], index: 0, kind: input, shape index: {}]   ;;  %s512_s1 = inlined_call_operand.vmem [shape: s32[16,1], index: 1, kind: input, shape index: {}]   ;;  %s513_s2 = inlined_call_operand.hbm [shape: f32[128,128], index: 2, kind: input, shape index: {}]   ;;  %s514_s3 = inlined_call_operand.hbm [shape: f32[16,128], index: 3, kind: output, shape index: {0}]   ;;  %s515_s4 = inlined_call_operand.hbm [shape: f32[8,128], index: 4, kind: output, shape index: {1}]  }
   0x1   :  { %11 = vsyncpa [#allocation4], 0 }
   0x2   :  { %12 = vsyncpa [#allocation7], 0  ;;  %s421_s15 = smov [#allocation2]   ;;  %s349_s19 = scalar_lea.hbm %s513_s2, 2048 }
   0x3   :  { %s22_s16 = sshll.u32 %s421_s15, 4  ;;  %p350_p0 = scmp.ne.s32.totalorder %s513_s2, %s349_s19  ;;  %s23_s16 = int_to_ptr.vmem [resolvable:$true] %s22_s16 }
   0x4   :  { %p353_p1 = scmp.lt.u32.totalorder %s349_s19, %s513_s2 }
   0x6   :  { %p355_p2 = pnand %p353_p1, %p350_p0 }
   0x8   :  { %358 = shalt.err (!%p355_p2)
}
   0x9   :  { %s359_s24 = scalar_lea.vmem %s23_s16, 2048  ;;  %p364_p4 = scmp.lt.s32.totalorder %s23_s16, %s23_s16 }
   0xa   :  { %p360_p3 = scmp.ne.s32.totalorder %s23_s16, %s359_s24  ;;  %p365_p5 = scmp.lt.s32.totalorder %s359_s24, %s359_s24 }
   0xc   :  { %p366_p6 = por %p365_p5, %p364_p4 }
   0xe   :  { %p367_p7 = pnand %p366_p6, %p360_p3 }
  0x10   :  { %370 = shalt.err (!%p367_p7)
}
  0x11   :  { %s422_s25 = smov 128   ;;  %s423_s26 = smov 8  }
  0x12   :  { %28 = dma.hbm_to_vmem [thread:$0]  %s513_s2, 2048, %s23_s16, [#allocation3], %s422_s25, %s422_s25, %s423_s26  }
  0x13   :  { %415 = dma.done.wait [#allocation3], 2048  }
  0x14   :  { %416 = vsyncadd [#allocation3], 4294965248  ;;  %v424_v0 = vmov 0   ;;  %v32_v1 = vld [vmem:[%s511_s0] sm:$0xff]  ;;  %v51_v3 = vld [vmem:[#allocation2 + $0x8] sm:$0xff]  ;;  %v36_v28 = vlaneseq  ;;  %v425_v31 = vmov 1.0  }
  0x15   :  { %339 = vset.pattern.permute.xlu0 %v424_v0  ;;  %340 = vset.pattern.permute.xlu1 %v424_v0  ;;  %v50_v2 = vld [vmem:[#allocation2] sm:$0xff]  ;;  %v52_v4 = vld [vmem:[#allocation2 + $0x10] sm:$0xff]  ;;  %v33_v5 = vld [vmem:[%s511_s0 + $0x8] sm:$0xff]  ;;  %vm195_vm5 = vcmask 7168  }
  0x16   :  { %39 = vperm.xlu0 %339, %v32_v1   ;;  %v298_v6 = vpack.c.bf16 %v51_v3, %v50_v2  ;;  %v53_v7 = vld [vmem:[#allocation2 + $0x18] sm:$0xff]  ;;  %v54_v9 = vld [vmem:[#allocation2 + $0x20] sm:$0xff]  ;;  %v55_v10 = vld [vmem:[#allocation2 + $0x28] sm:$0xff]  ;;  %v37_v29 = vand.u32 127, %v36_v28 }
  0x17   :  { %v302_v8 = vpack.c.bf16 %v53_v7, %v52_v4  ;;  %v34_v11 = vld [vmem:[%s512_s1] sm:$0xff]  ;;  %v306_v12 = vpack.c.bf16 %v55_v10, %v54_v9  ;;  %v56_v13 = vld [vmem:[#allocation2 + $0x30] sm:$0xff]  ;;  %v57_v14 = vld [vmem:[#allocation2 + $0x38] sm:$0xff] }
  0x18   :  { %299 = vmatprep.subr.bf16.mxu0 %v298_v6  ;;  %v310_v15 = vpack.c.bf16 %v57_v14, %v56_v13  ;;  %v58_v16 = vld [vmem:[#allocation2 + $0x40] sm:$0xff]  ;;  %v59_v17 = vld [vmem:[#allocation2 + $0x48] sm:$0xff]  ;;  %v60_v19 = vld [vmem:[#allocation2 + $0x50] sm:$0xff]  ;;  %vm143_vm2 = vcmp.lt.s32.totalorder %v37_v29, 17 }
  0x19   :  { %301 = vmatpush3.bf16.msra.mxu0 %v298_v6  ;;  %v314_v18 = vpack.c.bf16 %v59_v17, %v58_v16  ;;  %v61_v20 = vld [vmem:[#allocation2 + $0x58] sm:$0xff]  ;;  %v62_v22 = vld [vmem:[#allocation2 + $0x60] sm:$0xff]  ;;  %v63_v23 = vld [vmem:[#allocation2 + $0x68] sm:$0xff] }
  0x1a   :  { %42 = vperm.xlu0 %339, %v33_v5   ;;  %303 = vmatprep.subr.bf16.mxu0 %v302_v8  ;;  %v318_v21 = vpack.c.bf16 %v61_v20, %v60_v19  ;;  %v322_v24 = vpack.c.bf16 %v63_v23, %v62_v22  ;;  %v64_v25 = vld [vmem:[#allocation2 + $0x70] sm:$0xff]  ;;  %v65_v26 = vld [vmem:[#allocation2 + $0x78] sm:$0xff]  ;;  %v35_v37 = vld [vmem:[%s512_s1 + $0x8] sm:$0xff]  ;;  %s426_s1 = smov [#allocation5]  }
  0x1b   :  { %v326_v27 = vpack.c.bf16 %v65_v26, %v64_v25  ;;  %s215_s9 = sshll.u32 %s426_s1, 4  ;;  %s216_s9 = int_to_ptr.vmem [resolvable:$true] %s215_s9 }
  0x1c   :  { %s371_s10 = scalar_lea.vmem %s216_s9, 256  ;;  %p376_p9 = scmp.lt.s32.totalorder %s216_s9, %s216_s9 }
  0x1d   :  { %305 = vmatpush3.bf16.msra.mxu0 %v302_v8  ;;  %p372_p8 = scmp.ne.s32.totalorder %s216_s9, %s371_s10  ;;  %p377_p10 = scmp.lt.s32.totalorder %s371_s10, %s371_s10 }
  0x1e   :  { %169 = vperm.xlu0 %339, %v34_v11   ;;  %307 = vmatprep.subr.bf16.mxu0 %v306_v12 }
  0x1f   :  { %p378_p11 = por %p377_p10, %p376_p9 }
  0x21   :  { %309 = vmatpush3.bf16.msra.mxu0 %v306_v12  ;;  %p379_p12 = pnand %p378_p11, %p372_p8 }
  0x22   :  { %311 = vmatprep.subr.bf16.mxu0 %v310_v15 }
  0x25   :  { %313 = vmatpush3.bf16.msra.mxu0 %v310_v15 }
  0x26   :  { %315 = vmatprep.subr.bf16.mxu0 %v314_v18 }
  0x29   :  { %317 = vmatpush3.bf16.msra.mxu0 %v314_v18 }
  0x2a   :  { %319 = vmatprep.subr.bf16.mxu0 %v318_v21 }
  0x2d   :  { %321 = vmatpush3.bf16.msra.mxu0 %v318_v21 }
  0x2e   :  { %323 = vmatprep.subr.bf16.mxu0 %v322_v24 }
  0x31   :  { %325 = vmatpush3.bf16.msra.mxu0 %v322_v24 }
  0x32   :  { %327 = vmatprep.subr.bf16.mxu0 %v326_v27 }
  0x35   :  { %329 = vmatpush3.bf16.msra.mxu0 %v326_v27 }
  0x95   :  { %v40_v30 = vpop.permute.xlu0 %39 }
  0x96   :  { %vm44_vm0 = vcmp.eq.s32.totalorder %v37_v29, %v40_v30 }
  0x97   :  { %295 = vmatprep.mubr.msk.f32.mxu0 %vm44_vm0, %v425_v31 }
  0x99   :  { %v43_v32 = vpop.permute.xlu0 %42 }
  0x9a   :  { %vm45_vm1 = vcmp.eq.s32.totalorder %v37_v29, %v43_v32 }
  0x9b   :  { %296 = vmatmul.mubr.msk.f32.vlgmr.msra.gmra.mrb[0].mxu0 %vm45_vm1, %v425_v31 }
  0x9d   :  { %v170_v47 = vpop.permute.xlu0 %169 }
  0x9e   :  { %vm174_vm3 = vcmp.eq.s32.totalorder %v37_v29, %v170_v47 }
 0x16e   :  { %v297_v33 = vpop.f32.mrb[0].mxu0 }
 0x16f   :  { %142 = vst [vmem:[#allocation5 + $0x8] sm:$0xff] %v297_v33  ;;  %v132_v34 = vpop.f32.mrb[1].mxu0  ;;  %v145_v35 = vsel %vm143_vm2, %v297_v33, -1e+30 }
 0x170   :  { %141 = vst [vmem:[#allocation5] sm:$0xff] %v132_v34  ;;  %148 = vmax.xlane.f32.xlu1 %v145_v35  ;;  %v144_v36 = vsel %vm143_vm2, %v132_v34, -1e+30  ;;  %v176_v50 = vsel %vm174_vm3, %v132_v34, 0.0 }
 0x174   :  { %146 = vmax.xlane.f32.xlu1 %v144_v36 }
 0x185   :  { %172 = vperm.xlu1 %340, %v35_v37  }
 0x1fd   :  { %v149_v38 = vpop.xlane.xlu1 %148 }
 0x1fe   :  { %v151_v39 = vsub.f32 %v297_v33, %v149_v38 }
 0x200   :  { %v154_v40 = vmul.f32 1.442695, %v151_v39 }
 0x201   :  { %v147_v41 = vpop.xlane.xlu1 %146 }
 0x202   :  { %341 = vpow2.f32 %v154_v40  ;;  %v150_v42 = vsub.f32 %v132_v34, %v147_v41 }
 0x204   :  { %v152_v43 = vmul.f32 1.442695, %v150_v42 }
 0x205   :  { %v173_v49 = vpop.permute.xlu1 %172 }
 0x206   :  { %343 = vpow2.f32 %v152_v43  ;;  %vm175_vm4 = vcmp.eq.s32.totalorder %v37_v29, %v173_v49 }
 0x207   :  { %v177_v51 = vsel %vm175_vm4, %v297_v33, 0.0 }
 0x20c   :  { %v342_v44 = vpop.eup %341 }
 0x20d   :  { %v157_v45 = vsel %vm143_vm2, %v342_v44, 0.0 }
 0x20e   :  { %160 = vadd.xlane.f32.xlu1 %v157_v45 }
 0x210   :  { %v344_v46 = vpop.eup %343 }
 0x211   :  { %v156_v48 = vsel %vm143_vm2, %v344_v46, 0.0 }
 0x212   :  { %158 = vadd.xlane.f32.xlu0 %v156_v48 }
 0x216   :  { %178 = vadd.xlane.f32.xlu0 %v176_v50 }
 0x21a   :  { %180 = vadd.xlane.f32.xlu0 %v177_v51 }
 0x29b   :  { %v161_v52 = vpop.xlane.xlu1 %160 }
 0x29c   :  { %345 = vlog2.f32 %v161_v52 }
 0x29f   :  { %v159_v53 = vpop.xlane.xlu0 %158 }
 0x2a0   :  { %347 = vlog2.f32 %v159_v53 }
 0x2a3   :  { %v179_v55 = vpop.xlane.xlu0 %178 }
 0x2a6   :  { %v346_v54 = vpop.eup %345 }
 0x2a7   :  { %v165_v56 = vmul.f32 0.6931472, %v346_v54  ;;  %v181_v60 = vpop.xlane.xlu0 %180 }
 0x2a9   :  { %v167_v57 = vadd.f32 %v165_v56, %v149_v38 }
 0x2aa   :  { %v348_v58 = vpop.eup %347 }
 0x2ab   :  { %v163_v59 = vmul.f32 0.6931472, %v348_v58  ;;  %v192_v62 = vsub.f32 %v167_v57, %v181_v60 }
 0x2ad   :  { %v166_v61 = vadd.f32 %v163_v59, %v147_v41  ;;  %v197_v1 = vsel %vm195_vm5, %v192_v62, 0.0 }
 0x2af   :  { %v191_v63 = vsub.f32 %v166_v61, %v179_v55 }
 0x2b1   :  { %v196_v0 = vsel %vm195_vm5, %v191_v63, 0.0 }
 0x2b2   :  { %v198_v2 = vadd.f32 %v197_v1, %v196_v0 }
 0x2b4   :  { %199 = vadd.xlane.f32.xlu0 %v198_v2 }
 0x2b5   :  { %382 = shalt.err (!%p379_p12)
}
 0x2b6   :  { %s383_s13 = scalar_lea.hbm %s514_s3, 256 }
 0x2b7   :  { %p384_p13 = scmp.ne.s32.totalorder %s514_s3, %s383_s13  ;;  %p387_p0 = scmp.lt.u32.totalorder %s383_s13, %s514_s3 }
 0x2b9   :  { %p389_p1 = pnand %p387_p0, %p384_p13 }
 0x2bb   :  { %392 = shalt.err (!%p389_p1)
}
 0x2bc   :  { %221 = dma.vmem_to_hbm [thread:$0]  %s216_s9, 256, %s514_s3, [#allocation4], %s422_s25, %s422_s25, %s423_s26  }
 0x2bd   :  { %s427_s20 = smov [#allocation6]  }
 0x2be   :  { %s228_s21 = sshll.u32 %s427_s20, 4  ;;  %s229_s21 = int_to_ptr.vmem [resolvable:$true] %s228_s21 }
 0x2bf   :  { %s393_s23 = scalar_lea.vmem %s229_s21, 128  ;;  %p398_p3 = scmp.lt.s32.totalorder %s229_s21, %s229_s21 }
 0x2c0   :  { %p394_p2 = scmp.ne.s32.totalorder %s229_s21, %s393_s23  ;;  %p399_p4 = scmp.lt.s32.totalorder %s393_s23, %s393_s23 }
 0x2c2   :  { %p400_p5 = por %p399_p4, %p398_p3 }
 0x2c4   :  { %p401_p6 = pnand %p400_p5, %p394_p2 }
 0x341   :  { %v200_v3 = vpop.xlane.xlu0 %199 }
 0x342   :  { %v201_v4 = vrot.slane %v200_v3, 4 }
 0x344   :  { %v202_v5 = vadd.f32 %v201_v4, %v200_v3 }
 0x346   :  { %v203_v6 = vrot.slane %v202_v5, 2 }
 0x348   :  { %v204_v7 = vadd.f32 %v203_v6, %v202_v5 }
 0x34a   :  { %v205_v8 = vrot.slane %v204_v7, 1 }
 0x34c   :  { %v206_v9 = vadd.f32 %v205_v8, %v204_v7 }
 0x34e   :  { %330 = vpush %v206_v9 }
 0x37f   :  { %s331_s22 = spop %330 }
 0x380   :  { %v208_v10 = vstv %s331_s22 }
 0x381   :  { %209 = vst [vmem:[#allocation6] sm:$0xff] %v208_v10 }
 0x382   :  { %404 = shalt.err (!%p401_p6)
}
 0x383   :  { %s405_s25 = scalar_lea.hbm %s515_s4, 128 }
 0x384   :  { %p406_p7 = scmp.ne.s32.totalorder %s515_s4, %s405_s25  ;;  %p409_p8 = scmp.lt.u32.totalorder %s405_s25, %s515_s4 }
 0x386   :  { %p411_p9 = pnand %p409_p8, %p406_p7 }
 0x388   :  { %414 = shalt.err (!%p411_p9)
}
 0x389   :  { %231 = dma.vmem_to_hbm [thread:$0]  %s229_s21, 128, %s515_s4, [#allocation7]  }
 0x38a   :  { %417 = dma.done.wait [#allocation4], 256  }
 0x38b   :  { %418 = vsyncadd [#allocation4], 4294967040 }
 0x38c   :  { %419 = dma.done.wait [#allocation7], 128  }
 0x38d   :  { %420 = vsyncadd [#allocation7], 4294967168 }
 0x38e   :  { %238 = vsyncpa [#allocation3], 1 }
 0x38f   :  { %239 = vsyncpa [#allocation4], 1 }
 0x390   :  { %240 = vsyncpa [#allocation7], 1 }

</bundles_post_ra>
